<compile_context>
chip_gen: v6e
topology: v6e:2x2x1
jax: 0.10.0
libtpu: 0.0.40
codegen_flags: <defaults>
</compile_context>

<pallas_src>
import functools

import jax
import jax.numpy as jnp
import numpy as np
from jax.experimental import pallas as pl
from jax.experimental.pallas import tpu as pltpu

_N_TAPS = 4          # the Triton kernel hardcodes 4 taps and *0.25
_TM_MAX = 2048       # row-tile cap; keeps double-buffered tiles + temporaries
                     # comfortably inside v5e's 16 MiB default scoped VMEM


def _round_up(x: int, m: int) -> int:
    return ((x + m - 1) // m) * m


def _choose_tm(M: int) -> int:
    """Pick a row tile: large (HBM-bound), >= 2 blocks, even block count."""
    m8 = _round_up(max(M, 8), 8)
    if m8 <= 8:
        return 8
    tm = min(_TM_MAX, _round_up((m8 + 1) // 2, 8))   # at least 2 blocks
    nb = pl.cdiv(M, tm)
    if nb >= 3 and nb % 2 == 1:
        # Prefer an even number of blocks so the "parallel" grid axis splits
        # evenly across the two TensorCores on v7x.
        tm2 = _round_up(pl.cdiv(M, nb + 1), 8)
        if tm2 >= 8 and pl.cdiv(M, tm2) % 2 == 0:
            tm = tm2
    return tm


def _avgpool_vpu_kernel(x_ref, y_ref, *, padding: int, n_taps: int):
    """stride == 1 path: 4-tap sliding sum, VPU/XLU only (no MXU, no S DMA)."""
    tm, t_in = x_ref.shape
    t_out = y_ref.shape[-1]
    x = x_ref[...].astype(jnp.float32)

    # xp[:, j] == x[:, j - padding] for j in [padding, padding + t_in), else 0.
    w = t_out + n_taps - 1                       # largest lane index used is w-1
    pieces = []
    if padding > 0:
        pieces.append(jnp.zeros((tm, padding), jnp.float32))
    pieces.append(x)
    right = w - padding - t_in
    if right > 0:
        pieces.append(jnp.zeros((tm, right), jnp.float32))
    xp = pieces[0] if len(pieces) == 1 else jnp.concatenate(pieces, axis=-1)

    # out[:, t] = (1/4) * sum_k xp[:, t + k]  (shifted lane slices, VPU adds)
    acc = xp[:, 0:t_out]
    for k in range(1, n_taps):
        acc = acc + xp[:, k:k + t_out]
    y_ref[...] = (acc * (1.0 / n_taps)).astype(y_ref.dtype)


def _avgpool_mxu_kernel(x_ref, s_ref, y_ref):
    """General-stride fallback: y = x @ S on the MXU."""
    y_ref[...] = jnp.dot(
        x_ref[...], s_ref[...], preferred_element_type=jnp.float32
    ).astype(y_ref.dtype)


def _build_pool_matrix(t_in, t_out, stride, padding, n_taps, dtype):
    """Host-side (numpy) constant selection/averaging matrix (t_in, t_out)."""
    i = np.arange(t_in)[:, None]
    t = np.arange(t_out)[None, :]
    start = t * stride - padding
    member = (i >= start) & (i < start + n_taps)
    s = np.where(member, 1.0 / n_taps, 0.0).astype(np.float32)
    return jnp.asarray(s, dtype=dtype)


def avg_pool1d_pallas(x, kernel_size: int, stride: int = 1, padding: int = 0):
    """AvgPool1d matching the reference Triton kernel (4 taps, *0.25)."""
    N, C, T_in = x.shape
    assert T_in == 128, f"Expected T_in=128, got {T_in}"
    T_out = (T_in + 2 * padding - kernel_size) // stride + 1

    M = N * C
    x2 = x.reshape(M, T_in)
    TM = _choose_tm(M)
    grid = (pl.cdiv(M, TM),)

    x_spec = pl.BlockSpec((TM, T_in), lambda m: (m, 0))
    y_spec = pl.BlockSpec((TM, T_out), lambda m: (m, 0))   # lane dim = T_out exactly
    out_shape = jax.ShapeDtypeStruct((M, T_out), x.dtype)
    cparams = pltpu.CompilerParams(dimension_semantics=("parallel",))

    if stride == 1:
        kernel = functools.partial(
            _avgpool_vpu_kernel, padding=padding, n_taps=_N_TAPS)
        y2 = pl.pallas_call(
            kernel,
            out_shape=out_shape,
            grid=grid,
            in_specs=[x_spec],
            out_specs=y_spec,
            compiler_params=cparams,
        )(x2)
    else:
        # TODO(synk): strided path keeps the (mostly-zero) x @ S MXU matmul;
        # it is only taken when stride != 1.
        S = _build_pool_matrix(T_in, T_out, stride, padding, _N_TAPS, x.dtype)
        y2 = pl.pallas_call(
            _avgpool_mxu_kernel,
            out_shape=out_shape,
            grid=grid,
            in_specs=[
                x_spec,
                pl.BlockSpec((T_in, T_out), lambda m: (0, 0)),  # fetched once
            ],
            out_specs=y_spec,
            compiler_params=cparams,
        )(x2, S)

    return y2.reshape(N, C, T_out)


def avg_pool1d_ref(x, kernel_size: int, stride: int = 1, padding: int = 0):
    """Pure-JAX reference reproducing the Triton kernel semantics exactly."""
    N, C, T_in = x.shape
    T_out = (T_in + 2 * padding - kernel_size) // stride + 1
    t = jnp.arange(T_out)
    start = t * stride - padding
    out = jnp.zeros((N, C, T_out), dtype=jnp.float32)
    for k in range(_N_TAPS):
        pos = start + k
        valid = (pos >= 0) & (pos < T_in)
        vals = jnp.take(x, jnp.clip(pos, 0, T_in - 1), axis=2)
        out = out + jnp.where(valid[None, None, :], vals.astype(jnp.float32), 0.0)
    return (out * (1.0 / _N_TAPS)).astype(x.dtype)


if __name__ == "__main__":
    kernel_size, stride, padding = 4, 1, 2
    N, C, T_in = 2, 4, 128  # T_in fixed to 128 by the module

    key = jax.random.PRNGKey(0)
    x = jax.random.normal(key, (N, C, T_in), dtype=jnp.float32)

    y = jax.block_until_ready(avg_pool1d_pallas(x, kernel_size, stride, padding))
    y_ref = avg_pool1d_ref(x, kernel_size, stride, padding)
    assert y.shape == y_ref.shape, (y.shape, y_ref.shape)
    assert jnp.allclose(y, y_ref, atol=1e-5, rtol=1e-5), "mismatch vs reference"

    # Larger batch: exercises the big-TM / two-block megacore path.
    x_big = jax.random.normal(jax.random.PRNGKey(1), (16, 160, 128), jnp.float32)
    y_big = jax.block_until_ready(
        avg_pool1d_pallas(x_big, kernel_size, stride, padding))
    y_big_ref = avg_pool1d_ref(x_big, kernel_size, stride, padding)
    assert jnp.allclose(y_big, y_big_ref, atol=1e-5, rtol=1e-5), "mismatch (big)"

    # Non-divisible M: exercises the masked edge block (no row padding).
    x_odd = jax.random.normal(jax.random.PRNGKey(2), (3, 7, 128), jnp.float32)
    y_odd = jax.block_until_ready(
        avg_pool1d_pallas(x_odd, kernel_size, stride, padding))
    y_odd_ref = avg_pool1d_ref(x_odd, kernel_size, stride, padding)
    assert jnp.allclose(y_odd, y_odd_ref, atol=1e-5, rtol=1e-5), "mismatch (odd M)"

    # stride != 1 falls back to the MXU (x @ S) path.
    y_s2 = jax.block_until_ready(avg_pool1d_pallas(x, 4, 2, 1))
    y_s2_ref = avg_pool1d_ref(x, 4, 2, 1)
    assert jnp.allclose(y_s2, y_s2_ref, atol=1e-5, rtol=1e-5), "mismatch (stride=2)"

    print("KERNEL_OK")
</pallas_src>

<mosaic_0001>
module attributes {stable_mosaic.version = 11 : i64} {
  func.func @_avgpool_vpu_kernel(%arg0: i32, %arg1: memref<8x128xf32, #tpu.memory_space<vmem>>, %arg2: memref<8x129xf32, #tpu.memory_space<vmem>>) attributes {dimension_semantics = [#tpu.dimension_semantics<parallel>], iteration_bounds = array<i64: 1>, scalar_prefetch = 0 : i64, scratch_operands = 0 : i64, tpu.core_type = #tpu.core_type<tc>, window_params = [{transform_indices = @transform_0, window_bounds = array<i64: 8, 128>}, {transform_indices = @transform_1, window_bounds = array<i64: 8, 129>}]} {
    %c0 = arith.constant 0 : index
    %c0_0 = arith.constant 0 : index
    %0 = vector.load %arg1[%c0, %c0_0] : memref<8x128xf32, #tpu.memory_space<vmem>>, vector<8x128xf32>
    %cst = arith.constant 0.000000e+00 : f32
    %1 = vector.broadcast %cst : f32 to vector<8x2xf32>
    %cst_1 = arith.constant 0.000000e+00 : f32
    %2 = vector.broadcast %cst_1 : f32 to vector<8x2xf32>
    %3 = tpu.concatenate %1, %0, %2 in 1 : vector<8x2xf32>, vector<8x128xf32>, vector<8x2xf32> -> vector<8x132xf32>
    %4 = vector.extract_strided_slice %3 {offsets = [0, 0], sizes = [8, 129], strides = [1, 1]} : vector<8x132xf32> to vector<8x129xf32>
    %5 = vector.extract_strided_slice %3 {offsets = [0, 1], sizes = [8, 129], strides = [1, 1]} : vector<8x132xf32> to vector<8x129xf32>
    %6 = arith.addf %4, %5 : vector<8x129xf32>
    %7 = vector.extract_strided_slice %3 {offsets = [0, 2], sizes = [8, 129], strides = [1, 1]} : vector<8x132xf32> to vector<8x129xf32>
    %8 = arith.addf %6, %7 : vector<8x129xf32>
    %9 = vector.extract_strided_slice %3 {offsets = [0, 3], sizes = [8, 129], strides = [1, 1]} : vector<8x132xf32> to vector<8x129xf32>
    %10 = arith.addf %8, %9 : vector<8x129xf32>
    %cst_2 = arith.constant 2.500000e-01 : f32
    %11 = vector.broadcast %cst_2 : f32 to vector<8x129xf32>
    %12 = arith.mulf %10, %11 : vector<8x129xf32>
    %c0_3 = arith.constant 0 : index
    %c0_4 = arith.constant 0 : index
    %13 = vector.load %arg2[%c0_3, %c0_4] : memref<8x129xf32, #tpu.memory_space<vmem>>, vector<8x129xf32>
    tpu.vector_store %arg2[%c0_3, %c0_4], %12 {strides = array<i32>} : memref<8x129xf32, #tpu.memory_space<vmem>>, vector<8x129xf32>,
    return
  }
  func.func @transform_0(%arg0: i32) -> (i32, i32) {
    %c0_i32 = arith.constant 0 : i32
    %c0_i32_0 = arith.constant 0 : i32
    return %arg0, %c0_i32 : i32, i32
  }
  func.func @transform_1(%arg0: i32) -> (i32, i32) {
    %c0_i32 = arith.constant 0 : i32
    %c0_i32_0 = arith.constant 0 : i32
    return %arg0, %c0_i32 : i32, i32
  }
}

</mosaic_0001>

<bundles_post_ra>
// kernel: tpu_custom_call.1
= control target key start
LH: loop header
LB: loop body
LE: loop exit
PB: predicated region body
PF: predicated region fallthrough
CT: control target
= control target key end

     0   :  { %6 = vsyncpa [#allocation3], 0  ;;  %s153_s0 = inlined_call_operand.hbm [shape: f32[8,128], index: 0, kind: input, shape index: {}]   ;;  %s154_s1 = inlined_call_operand.hbm [shape: f32[8,129], index: 1, kind: output, shape index: {}]  }
   0x1   :  { %7 = vsyncpa [#allocation4], 0  ;;  %s131_s6 = smov [#allocation2]  }
   0x2   :  { %s14_s7 = sshll.u32 %s131_s6, 4  ;;  %s15_s7 = int_to_ptr.vmem [resolvable:$true] %s14_s7 }
   0x3   :  { %s95_s8 = scalar_lea.vmem %s15_s7, 128  ;;  %p100_p1 = scmp.lt.s32.totalorder %s15_s7, %s15_s7 }
   0x4   :  { %p96_p0 = scmp.ne.s32.totalorder %s15_s7, %s95_s8  ;;  %p101_p2 = scmp.lt.s32.totalorder %s95_s8, %s95_s8 }
   0x6   :  { %p102_p3 = por %p101_p2, %p100_p1 }
   0x8   :  { %p103_p4 = pnand %p102_p3, %p96_p0 }
   0xa   :  { %106 = shalt.err (!%p103_p4)
}
   0xb   :  { %17 = dma.hbm_to_vmem [thread:$0]  %s153_s0, 128, %s15_s7, [#allocation3]  }
   0xc   :  { %127 = dma.done.wait [#allocation3], 128  }
   0xd   :  { %128 = vsyncadd [#allocation3], 4294967168  ;;  %v21_v0 = vld [vmem:[#allocation2] sm:$0xff]  ;;  %s132_s11 = smov 2   ;;  %vm26_vm0 = vcmask 15360   ;;  %s133_s12 = smov 127  }
   0xe   :  { %23 = vrot.lane.b32.xlu0 %v21_v0, %s132_s11  ;;  %s134_s13 = smov 126   ;;  %s135_s14 = smov 125   ;;  %vm35_vm1 = vcmask 1039360   ;;  %vm45_vm2 = vcmask 1031168   ;;  %vm55_vm3 = vcmask 1022976   ;;  %vm64_vm4 = vcmask 7168  }
   0xf   :  { %s136_s0 = smov [#allocation5]  }
  0x10   :  { %s72_s15 = sshll.u32 %s136_s0, 4  ;;  %s73_s15 = int_to_ptr.vmem [resolvable:$true] %s72_s15 }
  0x11   :  { %s107_s16 = scalar_lea.vmem %s73_s15, 256  ;;  %p112_p6 = scmp.lt.s32.totalorder %s73_s15, %s73_s15 }
  0x12   :  { %p108_p5 = scmp.ne.s32.totalorder %s73_s15, %s107_s16  ;;  %p113_p7 = scmp.lt.s32.totalorder %s107_s16, %s107_s16 }
  0x14   :  { %p114_p8 = por %p113_p7, %p112_p6 }
  0x16   :  { %p115_p9 = pnand %p114_p8, %p108_p5 }
  0x80   :  { %v24_v1 = vpop.permute.xlu0 %23 }
  0x81   :  { %v27_v2 = vsel %vm26_vm0, 0.0, %v24_v1  ;;  %v28_v3 = vsel %vm26_vm0, %v24_v1, 0.0 }
  0x82   :  { %33 = vrot.lane.b32.xlu1 %v28_v3, %s133_s12  ;;  %31 = vrot.lane.b32.xlu0 %v27_v2, %s133_s12 }
  0x86   :  { %41 = vrot.lane.b32.xlu1 %v27_v2, %s134_s13  ;;  %43 = vrot.lane.b32.xlu0 %v28_v3, %s134_s13 }
  0x8a   :  { %51 = vrot.lane.b32.xlu1 %v27_v2, %s135_s14  ;;  %53 = vrot.lane.b32.xlu0 %v28_v3, %s135_s14 }
  0xf4   :  { %v34_v4 = vpop.permute.xlu1 %33  ;;  %v32_v5 = vpop.permute.xlu0 %31 }
  0xf5   :  { %v36_v6 = vsel %vm35_vm1, %v32_v5, %v34_v4  ;;  %v40_v9 = vadd.f32 %v34_v4, %v28_v3 }
  0xf6   :  { %v39_v11 = vadd.f32 %v36_v6, %v27_v2 }
  0xf8   :  { %v42_v7 = vpop.permute.xlu1 %41  ;;  %v44_v8 = vpop.permute.xlu0 %43 }
  0xf9   :  { %v46_v10 = vsel %vm45_vm2, %v42_v7, %v44_v8  ;;  %v50_v12 = vadd.f32 %v44_v8, %v40_v9 }
  0xfa   :  { %v49_v13 = vadd.f32 %v46_v10, %v39_v11 }
  0xfc   :  { %v52_v14 = vpop.permute.xlu1 %51  ;;  %v54_v15 = vpop.permute.xlu0 %53 }
  0xfd   :  { %v56_v16 = vsel %vm55_vm3, %v52_v14, %v54_v15  ;;  %v60_v17 = vadd.f32 %v54_v15, %v50_v12 }
  0xfe   :  { %v59_v18 = vadd.f32 %v56_v16, %v49_v13 }
  0xff   :  { %v62_v19 = vmul.f32 0.25, %v60_v17 }
 0x100   :  { %v61_v20 = vmul.f32 0.25, %v59_v18 }
 0x101   :  { %65 = vst.msk [vmem:[#allocation5 + $0x8] sm:$0xff] %vm64_vm4, %v62_v19 }
 0x102   :  { %63 = vst [vmem:[#allocation5] sm:$0xff] %v61_v20 }
 0x103   :  { %118 = shalt.err (!%p115_p9)
}
 0x104   :  { %75 = dma.vmem_to_hbm [thread:$0]  %s73_s15, 256, %s154_s1, [#allocation4]  }
 0x105   :  { %129 = dma.done.wait [#allocation4], 256  }
 0x106   :  { %130 = vsyncadd [#allocation4], 4294967040 }
 0x107   :  { %79 = vsyncpa [#allocation3], 1 }
 0x108   :  { %80 = vsyncpa [#allocation4], 1 }

</bundles_post_ra>
